<compile_context>
chip_gen: v7x
topology: tpu7x:2x2x1
jax: 0.10.0
libtpu: 0.0.40
codegen_flags: <defaults>
</compile_context>

<pallas_src>
import functools

import jax
import jax.numpy as jnp
from jax import lax
from jax.experimental import pallas as pl
from jax.experimental.pallas import tpu as pltpu


# ------------------------------- helpers ----------------------------------- #

def _round_up(x, m):
    return ((x + m - 1) // m) * m


def _pick_divisor_tile(dim, target):
    """Largest multiple of 128 that divides `dim` and is <= target."""
    t = min(target, dim)
    t -= t % 128
    t = max(t, 128)
    while dim % t:
        t -= 128
    return t


def _row_tiling(n, tm_target):
    """Pick (n_pad, tm): tm is a multiple of 128 that divides n_pad.

    Scores each candidate by padded O(n_pad^2) a_hat traffic divided by an
    estimated per-grid-step efficiency (tile DMA time vs ~0.35us fixed cost),
    and keeps >=2 row tiles when the graph is big enough (megacore on v7x).
    """
    n128 = _round_up(max(n, 1), 128)
    tk_est = float(min(n128, 4096))
    best_tm, best_score = 128, None
    for tm in range(128, min(tm_target, n128) + 1, 128):
        n_pad = _round_up(n128, tm)
        if n128 >= 256 and n_pad // tm < 2:
            continue  # would idle one v7x TensorCore
        dma_us = tm * tk_est * 2.0 / 1.0e6          # ~1 TB/s HBM, bf16 tile
        eff = dma_us / (dma_us + 0.35)              # ~0.35 us per grid step
        score = (n_pad * n_pad) / eff
        if best_score is None or score < best_score:
            best_tm, best_score = tm, score
    n_pad = _round_up(n128, best_tm)
    return n_pad, best_tm


def _pad2d(x, rows, cols):
    return jnp.pad(x, ((0, rows - x.shape[0]), (0, cols - x.shape[1])))


def _vmem_capacity_bytes():
    """Physical per-core VMEM; fall back to the most restrictive gen (v7x)."""
    try:
        info = pltpu.get_tpu_info()
        for name in ("vmem_capacity_bytes", "vmem_bytes", "vmem_size_bytes"):
            cap = getattr(info, name, None)
            if cap:
                return int(cap)
    except Exception:
        pass
    return 64 << 20


_VMEM_CAP = _vmem_capacity_bytes()
_VMEM_BUDGET = int(0.75 * _VMEM_CAP)   # max scoped VMEM we ever request


def _vmem_limit(tile_bytes):
    # ~1.5x headroom over the estimated working set, floor 16 MiB, capped at
    # 75% of this generation's physical VMEM (96 MiB on v5e/v6e, 48 MiB v7x).
    return int(min(max(int(1.5 * tile_bytes), 16 << 20), _VMEM_BUDGET))


# ----------------------------- Pallas kernels ------------------------------ #

def _xw_kernel_resident(x_ref, w_ref, o_ref):
    """o = X_tile @ W with W fully VMEM-resident (no reduction grid)."""
    o_ref[...] = jnp.dot(x_ref[...], w_ref[...],
                         preferred_element_type=jnp.float32).astype(o_ref.dtype)


def _xw_kernel_tiled(x_ref, w_ref, o_ref, acc_ref):
    """o = X @ W, reduction over F_in tiles (fallback for very wide F_in)."""
    k = pl.program_id(1)

    @pl.when(k == 0)
    def _():
        acc_ref[...] = jnp.zeros_like(acc_ref)

    acc_ref[...] += jnp.dot(x_ref[...], w_ref[...],
                            preferred_element_type=jnp.float32)

    @pl.when(k == pl.num_programs(1) - 1)
    def _():
        o_ref[...] = acc_ref[...].astype(o_ref.dtype)


def _agg_epilogue(acc, bias, apply_relu, num_valid_classes, out_dtype):
    out = acc + bias                              # broadcast only at finalize
    if apply_relu:
        out = jnp.maximum(out, 0.0)
    if num_valid_classes is not None:
        # Fused log_softmax over the real class columns only; padded lane
        # columns are masked out here and sliced away by the wrapper.
        col = lax.broadcasted_iota(jnp.int32, out.shape, 1)
        logits = jnp.where(col < num_valid_classes, out, -jnp.inf)
        m = jnp.max(logits, axis=1, keepdims=True)
        z = logits - m
        lse = jnp.log(jnp.sum(jnp.exp(z), axis=1, keepdims=True))
        out = z - lse
    return out.astype(out_dtype)


def _agg_kernel(a_ref, xw_ref, b_ref, o_ref, acc_ref, *,
                tk, xw_resident, apply_relu, num_valid_classes):
    """o = A_hat @ XW + b with ReLU or fused masked log_softmax epilogue."""
    k = pl.program_id(1)

    @pl.when(k == 0)
    def _():
        acc_ref[...] = jnp.zeros_like(acc_ref)

    if xw_resident:
        off = pl.multiple_of(k * tk, 128)
        xw_blk = xw_ref[pl.ds(off, tk), :]        # VMEM-resident XW, slice it
    else:
        xw_blk = xw_ref[...]                      # streamed (tk, F_out) tile
    acc_ref[...] += jnp.dot(a_ref[...], xw_blk,
                            preferred_element_type=jnp.float32)

    @pl.when(k == pl.num_programs(1) - 1)
    def _():
        o_ref[...] = _agg_epilogue(acc_ref[...], b_ref[...], apply_relu,
                                   num_valid_classes, o_ref.dtype)


# ------------------------------ kernel wrappers ----------------------------- #

def xw_matmul(x, w, *, tm, tk_target=2048):
    """Tiled X @ W (bf16 in, f32 accumulate, bf16 out)."""
    n_pad, f_in_pad = x.shape
    f_out_pad = w.shape[1]
    grid_rows = n_pad // tm

    w_bytes = f_in_pad * f_out_pad * w.dtype.itemsize
    x_tile_bytes = tm * f_in_pad * x.dtype.itemsize
    out_tile_bytes = tm * f_out_pad * 2
    resident_bytes = 2 * x_tile_bytes + 2 * w_bytes + 2 * out_tile_bytes

    if resident_bytes <= int(0.6 * _VMEM_BUDGET):
        # Collapsed reduction: 1-D row grid, W resident, no accumulator.
        return pl.pallas_call(
            _xw_kernel_resident,
            out_shape=jax.ShapeDtypeStruct((n_pad, f_out_pad), jnp.bfloat16),
            grid_spec=pltpu.PrefetchScalarGridSpec(
                num_scalar_prefetch=0,
                grid=(grid_rows,),
                in_specs=[
                    pl.BlockSpec((tm, f_in_pad), lambda i: (i, 0)),
                    pl.BlockSpec((f_in_pad, f_out_pad), lambda i: (0, 0)),
                ],
                out_specs=pl.BlockSpec((tm, f_out_pad), lambda i: (i, 0)),
            ),
            compiler_params=pltpu.CompilerParams(
                dimension_semantics=("parallel",),
                vmem_limit_bytes=_vmem_limit(resident_bytes),
            ),
            cost_estimate=pl.CostEstimate(
                flops=2 * n_pad * f_in_pad * f_out_pad,
                transcendentals=0,
                bytes_accessed=(n_pad * f_in_pad * x.dtype.itemsize
                                + w_bytes + n_pad * f_out_pad * 2),
            ),
        )(x, w)

    # Fallback: reduction over F_in tiles with an f32 VMEM accumulator.
    tk = _pick_divisor_tile(f_in_pad, tk_target)
    grid = (grid_rows, f_in_pad // tk)
    tile_bytes = (2 * tm * tk * x.dtype.itemsize
                  + 2 * tk * f_out_pad * w.dtype.itemsize
                  + 2 * out_tile_bytes
                  + tm * f_out_pad * 4)
    return pl.pallas_call(
        _xw_kernel_tiled,
        out_shape=jax.ShapeDtypeStruct((n_pad, f_out_pad), jnp.bfloat16),
        grid_spec=pltpu.PrefetchScalarGridSpec(
            num_scalar_prefetch=0,
            grid=grid,
            in_specs=[
                pl.BlockSpec((tm, tk), lambda i, k: (i, k)),
                pl.BlockSpec((tk, f_out_pad), lambda i, k: (k, 0)),
            ],
            out_specs=pl.BlockSpec((tm, f_out_pad), lambda i, k: (i, 0)),
            scratch_shapes=[pltpu.VMEM((tm, f_out_pad), jnp.float32)],
        ),
        compiler_params=pltpu.CompilerParams(
            dimension_semantics=("parallel", "arbitrary"),
            vmem_limit_bytes=_vmem_limit(tile_bytes),
        ),
        cost_estimate=pl.CostEstimate(
            flops=2 * n_pad * f_in_pad * f_out_pad,
            transcendentals=0,
            bytes_accessed=(n_pad * f_in_pad * x.dtype.itemsize
                            + grid_rows * w_bytes
                            + n_pad * f_out_pad * 2),
        ),
    )(x, w)


def aggregate(a_hat, xw, b, *, tm, apply_relu, num_valid_classes, out_dtype,
              tk_target=4096):
    """Tiled A_hat @ XW + b with fused ReLU / log_softmax epilogue."""
    n_pad = a_hat.shape[0]
    f_out_pad = xw.shape[1]
    out_itemsize = jnp.dtype(out_dtype).itemsize

    tk = _pick_divisor_tile(n_pad, tk_target)
    # Shrink tk if the double-buffered a_hat strip alone would blow the budget.
    while tk > 128 and 2 * tm * tk * a_hat.dtype.itemsize > int(0.5 * _VMEM_BUDGET):
        tk = _pick_divisor_tile(n_pad, tk - 128)
    grid = (n_pad // tm, n_pad // tk)

    xw_bytes = n_pad * f_out_pad * xw.dtype.itemsize
    a_tile_bytes = 2 * tm * tk * a_hat.dtype.itemsize        # double-buffered
    out_tile_bytes = 2 * tm * f_out_pad * out_itemsize
    acc_bytes = tm * f_out_pad * 4
    b_bytes = 2 * f_out_pad * 4

    resident_total = (a_tile_bytes + 2 * xw_bytes + out_tile_bytes
                      + acc_bytes + b_bytes)
    xw_resident = resident_total <= int(0.7 * _VMEM_BUDGET)

    if xw_resident:
        # XW is DMA'd into VMEM exactly once (constant block index) and sliced
        # in-kernel per reduction step -> no per-row-tile re-streaming.
        xw_spec = pl.BlockSpec((n_pad, f_out_pad), lambda i, k: (0, 0))
        tile_bytes = resident_total
        xw_traffic = xw_bytes
    else:
        xw_spec = pl.BlockSpec((tk, f_out_pad), lambda i, k: (k, 0))
        tile_bytes = (a_tile_bytes + 2 * tk * f_out_pad * xw.dtype.itemsize
                      + out_tile_bytes + acc_bytes + b_bytes)
        xw_traffic = grid[0] * xw_bytes           # re-streamed per row tile

    kernel = functools.partial(
        _agg_kernel, tk=tk, xw_resident=xw_resident,
        apply_relu=apply_relu, num_valid_classes=num_valid_classes)

    return pl.pallas_call(
        kernel,
        out_shape=jax.ShapeDtypeStruct((n_pad, f_out_pad), out_dtype),
        grid_spec=pltpu.PrefetchScalarGridSpec(
            num_scalar_prefetch=0,
            grid=grid,
            in_specs=[
                pl.BlockSpec((tm, tk), lambda i, k: (i, k)),
                xw_spec,
                pl.BlockSpec((1, f_out_pad), lambda i, k: (0, 0)),
            ],
            out_specs=pl.BlockSpec((tm, f_out_pad), lambda i, k: (i, 0)),
            scratch_shapes=[pltpu.VMEM((tm, f_out_pad), jnp.float32)],
        ),
        compiler_params=pltpu.CompilerParams(
            dimension_semantics=("parallel", "arbitrary"),
            vmem_limit_bytes=_vmem_limit(tile_bytes),
        ),
        cost_estimate=pl.CostEstimate(
            flops=2 * n_pad * n_pad * f_out_pad,
            transcendentals=(n_pad * f_out_pad
                             if num_valid_classes is not None else 0),
            bytes_accessed=(n_pad * n_pad * a_hat.dtype.itemsize
                            + xw_traffic
                            + n_pad * f_out_pad * out_itemsize),
        ),
    )(a_hat, xw, b)


# ------------------------------ JAX glue ----------------------------------- #

def build_norm_adj(edge_index, edge_weight, num_nodes, *, n_pad,
                   dtype=jnp.bfloat16):
    """Dense D^{-1/2}(A+I)D^{-1/2} matching PyG gcn_norm (a[dst, src] layout).

    Scatter-add runs in f32 for accuracy; the degree normalization, bf16 cast
    and padding fuse into a single XLA pass over the N^2 buffer.
    """
    # TODO(synk): for very large N this dense O(N^2) build should become a
    # Pallas scatter into a bf16 HBM buffer (scalability, not correctness).
    src, dst = edge_index[0], edge_index[1]
    if edge_weight is None:
        edge_weight = jnp.ones(src.shape[0], dtype=jnp.float32)
    loop = jnp.arange(num_nodes)
    src = jnp.concatenate([src, loop])
    dst = jnp.concatenate([dst, loop])
    w = jnp.concatenate([edge_weight.astype(jnp.float32),
                         jnp.ones(num_nodes, jnp.float32)])
    a = jnp.zeros((num_nodes, num_nodes), jnp.float32).at[dst, src].add(w)
    deg = a.sum(axis=1)
    dinv = jnp.where(deg > 0, 1.0 / jnp.sqrt(deg), 0.0)
    a_hat = (dinv[:, None] * a * dinv[None, :]).astype(dtype)
    return _pad2d(a_hat, n_pad, n_pad)


def glorot(key, shape):
    fan_in, fan_out = shape
    limit = jnp.sqrt(6.0 / (fan_in + fan_out))
    return jax.random.uniform(key, shape, jnp.float32, -limit, limit)


class GCNPallas:
    """Mirror of the PyTorch GCN module (eval mode: dropout is identity)."""

    def __init__(self, args, key, *, tm_target=512):
        self.args = args
        self.num_layer = int(args["num_layers"])
        missing = list({"features_num", "num_class", "num_layers",
                        "hidden", "dropout", "act"} - set(args.keys()))
        if missing:
            raise Exception("Missing keys: %s." % ",".join(missing))
        self.num_class = int(args["num_class"])
        self.tm_target = int(tm_target)
        dims = ([int(args["features_num"])]
                + [int(h) for h in list(args["hidden"])[: self.num_layer - 1]]
                + [self.num_class])
        self.dims = dims
        # lane-dense (multiple-of-128) padded feature dims for every layer.
        self.dims_pad = [_round_up(d, 128) for d in dims]
        # TODO(synk): only 'relu' activation is implemented; other activate_func
        # choices (tanh/sigmoid/elu/...) would need extra epilogue variants.
        self.weights, self.biases = [], []
        for i in range(self.num_layer):
            key, sub = jax.random.split(key)
            w = glorot(sub, (dims[i], dims[i + 1]))
            b = jnp.zeros((1, dims[i + 1]), jnp.float32)
            w_pad = _pad2d(w, self.dims_pad[i],
                           self.dims_pad[i + 1]).astype(jnp.bfloat16)
            b_pad = _pad2d(b, 1, self.dims_pad[i + 1])
            self.weights.append(w_pad)
            self.biases.append(b_pad)
        self._adj_cache = None   # (key, padded bf16 a_hat), reused across calls

    def _get_norm_adj(self, edge_index, edge_weight, n, n_pad):
        cache_key = (id(edge_index), id(edge_weight), n, n_pad)
        if self._adj_cache is not None and self._adj_cache[0] == cache_key:
            return self._adj_cache[1]
        a_hat = build_norm_adj(edge_index, edge_weight, n, n_pad=n_pad,
                               dtype=jnp.bfloat16)
        self._adj_cache = (cache_key, a_hat)
        return a_hat

    def forward(self, x, edge_index, edge_weight=None):
        n = x.shape[0]
        n_pad, tm = _row_tiling(n, self.tm_target)
        a_hat = self._get_norm_adj(edge_index, edge_weight, n, n_pad)
        h = _pad2d(x.astype(jnp.float32), n_pad,
                   self.dims_pad[0]).astype(jnp.bfloat16)
        for i in range(self.num_layer):
            is_last = (i == self.num_layer - 1)
            xw = xw_matmul(h, self.weights[i], tm=tm)
            h = aggregate(
                a_hat, xw, self.biases[i], tm=tm,
                apply_relu=not is_last,
                num_valid_classes=self.num_class if is_last else None,
                out_dtype=jnp.float32 if is_last else jnp.bfloat16)
            # F.dropout(p, training=False) -> identity in eval mode.
        return h[:n, :self.num_class]


# ------------------------------- demo main ---------------------------------- #

if __name__ == "__main__":
    key = jax.random.PRNGKey(0)

    num_nodes = 16
    features_num = 8
    num_edges = 40
    args = {
        "features_num": features_num,
        "num_class": 4,
        "num_layers": 2,
        "hidden": [32],
        "dropout": 0.5,
        "act": "relu",
    }

    k_x, k_src, k_dst, k_params = jax.random.split(key, 4)
    x = jax.random.normal(k_x, (num_nodes, features_num), dtype=jnp.float32)
    src = jax.random.randint(k_src, (num_edges,), 0, num_nodes, dtype=jnp.int32)
    dst = jax.random.randint(k_dst, (num_edges,), 0, num_nodes, dtype=jnp.int32)
    edge_index = jnp.stack([src, dst], axis=0)
    edge_weight = None  # matches the module's fallback path

    model = GCNPallas(args, k_params)
    out = model.forward(x, edge_index, edge_weight)
    jax.block_until_ready(out)

    assert out.shape == (num_nodes, args["num_class"])
    # rows of log_softmax should exp-sum to 1
    assert bool(jnp.all(jnp.abs(jnp.sum(jnp.exp(out), axis=1) - 1.0) < 1e-4))
    print("KERNEL_OK")
</pallas_src>

<mosaic_0001>
module attributes {stable_mosaic.version = 11 : i64} {
  func.func @_xw_kernel_resident(%arg0: i32, %arg1: memref<128x128xbf16, #tpu.memory_space<vmem>>, %arg2: memref<128x128xbf16, #tpu.memory_space<vmem>>, %arg3: memref<128x128xbf16, #tpu.memory_space<vmem>>) attributes {dimension_semantics = [#tpu.dimension_semantics<parallel>], iteration_bounds = array<i64: 1>, scalar_prefetch = 0 : i64, scratch_operands = 0 : i64, tpu.core_type = #tpu.core_type<tc>, window_params = [{transform_indices = @transform_0, window_bounds = array<i64: 128, 128>}, {pipeline_mode = #tpu.pipeline_mode<synchronous>, transform_indices = @transform_1, window_bounds = array<i64: 128, 128>}, {transform_indices = @transform_2, window_bounds = array<i64: 128, 128>}]} {
    %c0 = arith.constant 0 : index
    %c0_0 = arith.constant 0 : index
    %0 = vector.load %arg1[%c0, %c0_0] : memref<128x128xbf16, #tpu.memory_space<vmem>>, vector<128x128xbf16>
    %c0_1 = arith.constant 0 : index
    %c0_2 = arith.constant 0 : index
    %1 = vector.load %arg2[%c0_1, %c0_2] : memref<128x128xbf16, #tpu.memory_space<vmem>>, vector<128x128xbf16>
    %cst = arith.constant dense<0.000000e+00> : vector<128x128xf32>
    %2 = tpu.matmul %0, %1, %cst {dimension_numbers = #tpu.dot_dimension_numbers<[1], [0], [0], [1], [0, 0, 1, 1], [], []>} : vector<128x128xbf16>, vector<128x128xbf16>, vector<128x128xf32> -> vector<128x128xf32>
    %3 = arith.truncf %2 : vector<128x128xf32> to vector<128x128xbf16>
    %c0_3 = arith.constant 0 : index
    %c0_4 = arith.constant 0 : index
    %4 = vector.load %arg3[%c0_3, %c0_4] : memref<128x128xbf16, #tpu.memory_space<vmem>>, vector<128x128xbf16>
    tpu.vector_store %arg3[%c0_3, %c0_4], %3 {strides = array<i32>} : memref<128x128xbf16, #tpu.memory_space<vmem>>, vector<128x128xbf16>,
    return
  }
  func.func @transform_0(%arg0: i32) -> (i32, i32) {
    %c0_i32 = arith.constant 0 : i32
    %c0_i32_0 = arith.constant 0 : i32
    return %arg0, %c0_i32 : i32, i32
  }
  func.func @transform_1(%arg0: i32) -> (i32, i32) {
    %c0_i32 = arith.constant 0 : i32
    %c0_i32_0 = arith.constant 0 : i32
    %c0_i32_1 = arith.constant 0 : i32
    return %c0_i32, %c0_i32_0 : i32, i32
  }
  func.func @transform_2(%arg0: i32) -> (i32, i32) {
    %c0_i32 = arith.constant 0 : i32
    %c0_i32_0 = arith.constant 0 : i32
    return %arg0, %c0_i32 : i32, i32
  }
}

</mosaic_0001>

<bundles_post_ra>
// kernel: tpu_custom_call.1
= control target key start
LH: loop header
LB: loop body
LE: loop exit
PB: predicated region body
PF: predicated region fallthrough
CT: control target
= control target key end

     0   :  { %7 = vsyncpa [#allocation3], 0  ;;  %s681_s0 = inlined_call_operand.hbm [shape: bf16[128,128], index: 0, kind: input, shape index: {}]   ;;  %s682_s1 = inlined_call_operand.hbm [shape: bf16[128,128], index: 1, kind: input, shape index: {}]   ;;  %s683_s2 = inlined_call_operand.hbm [shape: bf16[128,128], index: 2, kind: output, shape index: {}]  }
   0x1   :  { %8 = vsyncpa [#allocation6], 0 }
   0x2   :  { %9 = vsyncpa [#allocation4], 0  ;;  %s616_s9 = smov [#allocation2]   ;;  %s544_s13 = scalar_lea.hbm %s681_s0, 1024 }
   0x3   :  { %s15_s10 = sshll.u32 %s616_s9, 4  ;;  %p545_p0 = scmp.ne.s32.totalorder %s681_s0, %s544_s13  ;;  %s16_s10 = int_to_ptr.vmem [resolvable:$true] %s15_s10 }
   0x4   :  { %p548_p1 = scmp.lt.u32.totalorder %s544_s13, %s681_s0 }
   0x6   :  { %p550_p2 = pnand %p548_p1, %p545_p0 }
   0x8   :  { %553 = shalt.err (!%p550_p2)
}
   0x9   :  { %s554_s18 = scalar_lea.vmem %s16_s10, 1024  ;;  %p559_p4 = scmp.lt.s32.totalorder %s16_s10, %s16_s10 }
   0xa   :  { %p555_p3 = scmp.ne.s32.totalorder %s16_s10, %s554_s18  ;;  %p560_p5 = scmp.lt.s32.totalorder %s554_s18, %s554_s18 }
   0xc   :  { %p561_p6 = por %p560_p5, %p559_p4 }
   0xe   :  { %p562_p7 = pnand %p561_p6, %p555_p3 }
  0x10   :  { %565 = shalt.err (!%p562_p7)
}
  0x11   :  { %s617_s19 = smov 64   ;;  %s618_s20 = smov 4  }
  0x12   :  { %21 = dma.hbm_to_vmem [thread:$0]  %s681_s0, 1024, %s16_s10, [#allocation3], %s617_s19, %s617_s19, %s618_s20  }
  0x13   :  { %s619_s23 = smov [#allocation5]   ;;  %s566_s27 = scalar_lea.hbm %s682_s1, 1024 }
  0x14   :  { %s27_s24 = sshll.u32 %s619_s23, 4  ;;  %p567_p8 = scmp.ne.s32.totalorder %s682_s1, %s566_s27  ;;  %s28_s24 = int_to_ptr.vmem [resolvable:$true] %s27_s24 }
  0x15   :  { %p570_p9 = scmp.lt.u32.totalorder %s566_s27, %s682_s1 }
  0x17   :  { %p572_p10 = pnand %p570_p9, %p567_p8 }
  0x19   :  { %575 = shalt.err (!%p572_p10)
}
  0x1a   :  { %s576_s4 = scalar_lea.vmem %s28_s24, 1024  ;;  %p581_p12 = scmp.lt.s32.totalorder %s28_s24, %s28_s24 }
  0x1b   :  { %p577_p11 = scmp.ne.s32.totalorder %s28_s24, %s576_s4  ;;  %p582_p13 = scmp.lt.s32.totalorder %s576_s4, %s576_s4 }
  0x1d   :  { %p583_p0 = por %p582_p13, %p581_p12 }
  0x1f   :  { %p584_p1 = pnand %p583_p0, %p577_p11 }
  0x21   :  { %587 = shalt.err (!%p584_p1)
}
  0x22   :  { %33 = dma.hbm_to_vmem [thread:$0]  %s682_s1, 1024, %s28_s24, [#allocation6], %s617_s19, %s617_s19, %s618_s20  }
  0x23   :  { %610 = dma.done.wait [#allocation3], 1024  }
  0x24   :  { %611 = vsyncadd [#allocation3], 4294966272 }
  0x25   :  { %612 = dma.done.wait [#allocation6], 1024  }
  0x26   :  { %613 = vsyncadd [#allocation6], 4294966272  ;;  %v528_v0 = vld [vmem:[#allocation5] sm:$0xff]   ;;  %v529_v1 = vld [vmem:[#allocation5 + $0x8] sm:$0xff]   ;;  %s620_s1 = smov [#allocation7]  }
  0x27   :  { %475 = vmatprep.subr.bf16.mxu0 %v528_v0  ;;  %507 = vmatprep.subr.bf16.mxu1 %v528_v0  ;;  %v530_v2 = vld [vmem:[#allocation5 + $0x10] sm:$0xff]   ;;  %v531_v3 = vld [vmem:[#allocation5 + $0x18] sm:$0xff]   ;;  %v536_v4 = vld [vmem:[#allocation2] sm:$0xff]   ;;  %s351_s6 = sshll.u32 %s620_s1, 4  ;;  %s352_s6 = int_to_ptr.vmem [resolvable:$true] %s351_s6 }
  0x28   :  { %476 = vmatpush3.bf16.msra.mxu0 %v528_v0  ;;  %515 = vmatpush3.bf16.msra.mxu1 %v528_v0  ;;  %v537_v5 = vld [vmem:[#allocation2 + $0x20] sm:$0xff]   ;;  %v533_v7 = vld [vmem:[#allocation5 + $0x28] sm:$0xff]   ;;  %v534_v8 = vld [vmem:[#allocation5 + $0x30] sm:$0xff]   ;;  %s588_s7 = scalar_lea.vmem %s352_s6, 1024  ;;  %p593_p3 = scmp.lt.s32.totalorder %s352_s6, %s352_s6 }
  0x29   :  { %477 = vmatprep.subr.bf16.mxu0 %v529_v1  ;;  %508 = vmatprep.subr.bf16.mxu1 %v529_v1  ;;  %v532_v6 = vld [vmem:[#allocation5 + $0x20] sm:$0xff]   ;;  %v535_v9 = vld [vmem:[#allocation5 + $0x38] sm:$0xff]   ;;  %v538_v10 = vld [vmem:[#allocation2 + $0x8] sm:$0xff]   ;;  %p589_p2 = scmp.ne.s32.totalorder %s352_s6, %s588_s7  ;;  %p594_p4 = scmp.lt.s32.totalorder %s588_s7, %s588_s7 }
  0x2a   :  { %491 = vmatprep.mubr.bf16.mxu0 %v536_v4  ;;  %499 = vmatprep.mubr.bf16.mxu1 %v537_v5  ;;  %v539_v11 = vld [vmem:[#allocation2 + $0x28] sm:$0xff]   ;;  %v540_v12 = vld [vmem:[#allocation2 + $0x10] sm:$0xff]   ;;  %v542_v14 = vld [vmem:[#allocation2 + $0x18] sm:$0xff]  }
  0x2b   :  { %v541_v13 = vld [vmem:[#allocation2 + $0x30] sm:$0xff]   ;;  %v543_v15 = vld [vmem:[#allocation2 + $0x38] sm:$0xff]   ;;  %p595_p5 = por %p594_p4, %p593_p3 }
  0x2c   :  { %478 = vmatpush3.bf16.msra.mxu0 %v529_v1  ;;  %516 = vmatpush3.bf16.msra.mxu1 %v529_v1 }
  0x2d   :  { %479 = vmatprep.subr.bf16.mxu0 %v530_v2  ;;  %509 = vmatprep.subr.bf16.mxu1 %v530_v2  ;;  %p596_p6 = pnand %p595_p5, %p589_p2 }
  0x30   :  { %480 = vmatpush3.bf16.msra.mxu0 %v530_v2  ;;  %517 = vmatpush3.bf16.msra.mxu1 %v530_v2 }
  0x31   :  { %481 = vmatprep.subr.bf16.mxu0 %v531_v3  ;;  %510 = vmatprep.subr.bf16.mxu1 %v531_v3 }
  0x34   :  { %482 = vmatpush3.bf16.msra.mxu0 %v531_v3  ;;  %518 = vmatpush3.bf16.msra.mxu1 %v531_v3 }
  0x35   :  { %483 = vmatprep.subr.bf16.mxu0 %v532_v6  ;;  %511 = vmatprep.subr.bf16.mxu1 %v532_v6 }
  0x38   :  { %484 = vmatpush3.bf16.msra.mxu0 %v532_v6  ;;  %519 = vmatpush3.bf16.msra.mxu1 %v532_v6 }
  0x39   :  { %485 = vmatprep.subr.bf16.mxu0 %v533_v7  ;;  %512 = vmatprep.subr.bf16.mxu1 %v533_v7 }
  0x3c   :  { %486 = vmatpush3.bf16.msra.mxu0 %v533_v7  ;;  %520 = vmatpush3.bf16.msra.mxu1 %v533_v7 }
  0x3d   :  { %487 = vmatprep.subr.bf16.mxu0 %v534_v8  ;;  %513 = vmatprep.subr.bf16.mxu1 %v534_v8 }
  0x40   :  { %488 = vmatpush3.bf16.msra.mxu0 %v534_v8  ;;  %521 = vmatpush3.bf16.msra.mxu1 %v534_v8 }
  0x41   :  { %489 = vmatprep.subr.bf16.mxu0 %v535_v9  ;;  %514 = vmatprep.subr.bf16.mxu1 %v535_v9 }
  0x44   :  { %490 = vmatpush3.bf16.msra.mxu0 %v535_v9  ;;  %522 = vmatpush3.bf16.msra.mxu1 %v535_v9 }
  0x47   :  { %492 = vmatmul.mubr.bf16.vlgmr.msra.gmra.mrb[0].mxu0 %v538_v10  ;;  %500 = vmatmul.mubr.bf16.vlgmr.msra.gmra.mrb[0].mxu1 %v539_v11 }
  0x48   :  { %495 = vmatprep.mubr.bf16.mxu0 %v540_v12  ;;  %503 = vmatprep.mubr.bf16.mxu1 %v541_v13 }
  0x4f   :  { %496 = vmatmul.mubr.bf16.gmra.mrb[4].mxu0 %v542_v14  ;;  %504 = vmatmul.mubr.bf16.gmra.mrb[4].mxu1 %v543_v15 }
 0x11a   :  { %v493_v16 = vpop.f32.mrb[0].mxu0  ;;  %v501_v17 = vpop.f32.mrb[0].mxu1 }
 0x11b   :  { %v203_v18 = vpop.f32.mrb[1].mxu0  ;;  %v235_v19 = vpop.f32.mrb[1].mxu1 }
 0x11c   :  { %v494_v20 = vpop.f32.mrb[2].mxu0  ;;  %v502_v21 = vpop.f32.mrb[2].mxu1 }
 0x11d   :  { %v420_v22 = vpack.c.bf16 %v494_v20, %v493_v16  ;;  %v440_v23 = vpack.c.bf16 %v502_v21, %v501_v17  ;;  %v206_v24 = vpop.f32.mrb[3].mxu0  ;;  %v238_v25 = vpop.f32.mrb[3].mxu1 }
 0x11e   :  { %v415_v26 = vpack.c.bf16 %v206_v24, %v203_v18  ;;  %v435_v27 = vpack.c.bf16 %v238_v25, %v235_v19 }
 0x11f   :  { %452 = vst [vmem:[#allocation7 + $0x8] sm:$0xff] %v420_v22   ;;  %456 = vst [vmem:[#allocation7 + $0x28] sm:$0xff] %v440_v23  }
 0x120   :  { %416 = vst [vmem:[#allocation7] sm:$0xff] %v415_v26   ;;  %455 = vst [vmem:[#allocation7 + $0x20] sm:$0xff] %v435_v27  }
 0x122   :  { %v497_v28 = vpop.f32.mrb[4].mxu0  ;;  %v505_v29 = vpop.f32.mrb[4].mxu1 }
 0x123   :  { %v219_v30 = vpop.f32.mrb[5].mxu0  ;;  %v251_v31 = vpop.f32.mrb[5].mxu1 }
 0x124   :  { %v498_v32 = vpop.f32.mrb[6].mxu0  ;;  %v506_v33 = vpop.f32.mrb[6].mxu1 }
 0x125   :  { %v430_v34 = vpack.c.bf16 %v498_v32, %v497_v28  ;;  %v450_v35 = vpack.c.bf16 %v506_v33, %v505_v29  ;;  %v222_v36 = vpop.f32.mrb[7].mxu0  ;;  %v254_v37 = vpop.f32.mrb[7].mxu1 }
 0x126   :  { %v425_v38 = vpack.c.bf16 %v222_v36, %v219_v30  ;;  %v445_v39 = vpack.c.bf16 %v254_v37, %v251_v31 }
 0x127   :  { %454 = vst [vmem:[#allocation7 + $0x18] sm:$0xff] %v430_v34   ;;  %458 = vst [vmem:[#allocation7 + $0x38] sm:$0xff] %v450_v35  }
 0x128   :  { %453 = vst [vmem:[#allocation7 + $0x10] sm:$0xff] %v425_v38   ;;  %457 = vst [vmem:[#allocation7 + $0x30] sm:$0xff] %v445_v39  }
 0x129   :  { %599 = shalt.err (!%p596_p6)
}
 0x12a   :  { %s600_s10 = scalar_lea.hbm %s683_s2, 1024 }
 0x12b   :  { %p601_p7 = scmp.ne.s32.totalorder %s683_s2, %s600_s10  ;;  %p604_p8 = scmp.lt.u32.totalorder %s600_s10, %s683_s2 }
 0x12d   :  { %p606_p9 = pnand %p604_p8, %p601_p7 }
 0x12f   :  { %609 = shalt.err (!%p606_p9)
}
 0x130   :  { %357 = dma.vmem_to_hbm [thread:$0]  %s352_s6, 1024, %s683_s2, [#allocation4], %s617_s19, %s617_s19, %s618_s20  }
 0x131   :  { %614 = dma.done.wait [#allocation4], 1024  }
 0x132   :  { %615 = vsyncadd [#allocation4], 4294966272 }
 0x133   :  { %361 = vsyncpa [#allocation3], 1 }
 0x134   :  { %362 = vsyncpa [#allocation6], 1 }
 0x135   :  { %363 = vsyncpa [#allocation4], 1 }

</bundles_post_ra>
